<compile_context>
chip_gen: v5e
topology: v5e:2x2
jax: 0.10.0
libtpu: 0.0.40
codegen_flags: <defaults>
</compile_context>

<pallas_src>
import numpy as np
import jax
import jax.numpy as jnp
from jax import lax
from jax.experimental import pallas as pl
from jax.experimental.pallas import tpu as pltpu

ACT_GAIN = float(np.sqrt(2.0))   # bias_act 'lrelu' def_gain, gain=1
LRELU_SLOPE = 0.2
RGB_PAD = 8                      # pad img channels to one f32 sublane tile (img stored transposed)


# ----------------------------------------------------------------------------- kernel
def tri_block_kernel(xcolT_ref, wmodT_ref, bias_ref, noise_ref, wrgb_ref, brgb_ref,
                     xoutT_ref, imgT_ref):
    # One grid step == one spatial tile (TP columns of P = H*W).  ALL (stream, batch)
    # samples are baked into the M dimension of the matmuls via pre-modulated weights,
    # so the shared bf16 im2col tile goes straight to the MXU with no VPU preprocessing.
    yT = jnp.dot(wmodT_ref[...], xcolT_ref[...],
                 preferred_element_type=jnp.float32)              # (SB*Cout, TP)
    # noise (per spatial position, row) + bias (per channel, column), lrelu * sqrt(2)
    yT = yT + bias_ref[...] + noise_ref[...]
    yT = jnp.where(yT >= 0.0, yT, LRELU_SLOPE * yT) * ACT_GAIN
    xoutT_ref[...] = yT.astype(xoutT_ref.dtype)                   # channels-major, lane-dense, unpadded

    # ToRGB: modulated 1x1 conv (no demod); per-sample styles folded into a
    # block-diagonal bf16 weight so one matmul covers all SB samples.
    rgbT = jnp.dot(wrgb_ref[...], yT.astype(jnp.bfloat16),
                   preferred_element_type=jnp.float32)            # (SB*RGB_PAD, TP)
    imgT_ref[...] = (rgbT + brgb_ref[...]).astype(imgT_ref.dtype)


# ----------------------------------------------------------------------------- glue
def _affine(w, A_w, A_b):
    # FullyConnectedLayer: x @ (W * 1/sqrt(in_features)).T + b
    gain = 1.0 / np.sqrt(A_w.shape[1])
    return w @ (A_w * gain).T + A_b


def _spatial_tile(P):
    # Largest lane-dense tile (<=1024) that divides P while keeping >=2 grid steps
    # (so v7x's two TensorCores both get work); fall back to a single full tile.
    if P % 128 != 0:
        return P
    for tp in (1024, 512, 256, 128):
        if P % tp == 0 and P // tp >= 2:
            return tp
    return P


def tri_synthesis_block(params, ws1, ws2, ws3):
    """TriSynthesisBlock.forward for in_channels==0 / 'skip' / is_last.
    Inputs x1..x3 are the learned const; img1..img3 are None (first block).
    Returns (x1, x2, x3, img1, img2, img3) in NHWC float32."""
    ws_all = jnp.stack([ws1, ws2, ws3], axis=0)            # (3, B, num_ws, w_dim)
    S, B = ws_all.shape[0], ws_all.shape[1]
    SB = S * B

    const = params['const']                                # (H, W, C) NHWC-ordered const
    H, W, C = const.shape
    weight = params['conv1_weight']                        # (Cout, Cin=C, 3, 3)
    Cout = weight.shape[0]
    img_ch = params['torgb_weight'].shape[0]
    P, K9 = H * W, 9 * C
    SBC, SBR = SB * Cout, SB * RGB_PAD

    ws_flat = ws_all.reshape(SB, ws_all.shape[2], ws_all.shape[3])

    # ---- affine styles / demod coefficients (tiny matmuls, wrapper glue) ----
    styles = _affine(ws_flat[:, 0], params['conv1_affine_w'], params['conv1_affine_b'])   # (SB, C)
    dcoefs = lax.rsqrt(jnp.sum((weight[None] * styles[:, None, :, None, None]) ** 2,
                               axis=(2, 3, 4)) + 1e-8)                                    # (SB, Cout)
    styles_rgb = _affine(ws_flat[:, 1], params['torgb_affine_w'], params['torgb_affine_b']) \
                 * (1.0 / np.sqrt(Cout))                                                  # (SB, Cout)

    # ---- shared (stream- and batch-invariant) im2col of the const, transposed so the
    #      spatial axis P is the lane dimension ----
    xpad = jnp.pad(const, ((1, 1), (1, 1), (0, 0)))
    cols = [xpad[ky:ky + H, kx:kx + W, :] for ky in range(3) for kx in range(3)]
    xcol = jnp.concatenate(cols, axis=-1).reshape(P, K9)           # channel order (ky,kx,ci)
    xcolT = xcol.T.astype(jnp.bfloat16)                            # (K9, P)

    # ---- fold style (per K9 row) and demod (per Cout column) into per-sample weights ----
    wmat = jnp.transpose(weight, (2, 3, 1, 0)).reshape(K9, Cout)   # (K9, Cout), (ky,kx,ci) rows
    styles9 = jnp.tile(styles, (1, 9))                             # (SB, K9)
    wmod = wmat[None] * styles9[:, :, None] * dcoefs[:, None, :]   # (SB, K9, Cout)
    wmodT = jnp.transpose(wmod, (0, 2, 1)).reshape(SBC, K9).astype(jnp.bfloat16)   # (SB*Cout, K9)

    bias_col = jnp.tile(params['conv1_bias'], SB)[:, None].astype(jnp.float32)      # (SB*Cout, 1)
    noise_row = (params['noise_const'] * params['noise_strength']).reshape(1, P).astype(jnp.float32)

    # ---- ToRGB: fold srgb into the 1x1 weight, block-diagonal over samples ----
    wrgb = params['torgb_weight'][:, :, 0, 0]                                        # (img_ch, Cout)
    wrgb_mod = wrgb[None] * styles_rgb[:, None, :]                                   # (SB, img_ch, Cout)
    wrgb_mod = jnp.pad(wrgb_mod, ((0, 0), (0, RGB_PAD - img_ch), (0, 0)))            # (SB, RGB_PAD, Cout)
    eye = jnp.eye(SB, dtype=wrgb_mod.dtype)
    wrgb_blk = jnp.einsum('sj,sdc->sdjc', eye, wrgb_mod).reshape(SBR, SBC).astype(jnp.bfloat16)
    brgb_col = jnp.tile(jnp.pad(params['torgb_bias'], (0, RGB_PAD - img_ch)), SB)[:, None]  # (SB*8, 1)

    TP = _spatial_tile(P)
    grid = (P // TP,)

    xoutT, imgT = pl.pallas_call(
        tri_block_kernel,
        out_shape=(jax.ShapeDtypeStruct((SBC, P), jnp.float32),
                   jax.ShapeDtypeStruct((SBR, P), jnp.float32)),
        grid=grid,
        in_specs=[
            pl.BlockSpec((K9, TP),   lambda i: (0, i)),   # im2col'ed const (shared, bf16), spatial-tiled
            pl.BlockSpec((SBC, K9),  lambda i: (0, 0)),   # pre-modulated conv weights (all samples)
            pl.BlockSpec((SBC, 1),   lambda i: (0, 0)),   # conv bias column (per channel, tiled over SB)
            pl.BlockSpec((1, TP),    lambda i: (0, i)),   # noise row (per spatial position)
            pl.BlockSpec((SBR, SBC), lambda i: (0, 0)),   # block-diag ToRGB weights (styles folded)
            pl.BlockSpec((SBR, 1),   lambda i: (0, 0)),   # ToRGB bias column
        ],
        out_specs=(pl.BlockSpec((SBC, TP), lambda i: (0, i)),
                   pl.BlockSpec((SBR, TP), lambda i: (0, i))),
        compiler_params=pltpu.CompilerParams(
            dimension_semantics=("parallel",),
            vmem_limit_bytes=32 * 1024 * 1024),
    )(xcolT, wmodT, bias_col, noise_row, wrgb_blk, brgb_col)

    # channels-major -> NHWC
    x_nhwc = jnp.transpose(xoutT.reshape(S, B, Cout, H, W), (0, 1, 3, 4, 2))
    img_nhwc = jnp.transpose(imgT.reshape(S, B, RGB_PAD, H, W)[:, :, :img_ch],
                             (0, 1, 3, 4, 2))
    return (x_nhwc[0], x_nhwc[1], x_nhwc[2], img_nhwc[0], img_nhwc[1], img_nhwc[2])


# ----------------------------------------------------------------------------- reference
def reference_forward(params, ws):
    const = params['const']
    H, W, C = const.shape
    B = ws.shape[0]
    weight = params['conv1_weight']
    Cout = weight.shape[0]
    x = jnp.broadcast_to(const[None], (B, H, W, C))
    styles = _affine(ws[:, 0], params['conv1_affine_w'], params['conv1_affine_b'])
    xm = x * styles[:, None, None, :]
    w_hwio = jnp.transpose(weight, (2, 3, 1, 0))
    y = lax.conv_general_dilated(xm, w_hwio, (1, 1), 'SAME',
                                 dimension_numbers=('NHWC', 'HWIO', 'NHWC'),
                                 precision=lax.Precision.HIGHEST)
    dcoefs = lax.rsqrt(jnp.sum((weight[None] * styles[:, None, :, None, None]) ** 2,
                               axis=(2, 3, 4)) + 1e-8)
    y = y * dcoefs[:, None, None, :]
    y = y + (params['noise_const'] * params['noise_strength'])[None, :, :, None]
    y = y + params['conv1_bias'][None, None, None, :]
    y = jnp.where(y >= 0, y, LRELU_SLOPE * y) * ACT_GAIN
    styles_rgb = _affine(ws[:, 1], params['torgb_affine_w'], params['torgb_affine_b']) \
                 * (1.0 / np.sqrt(Cout))
    wrgb = params['torgb_weight'][:, :, 0, 0].T
    rgb = jnp.einsum('bhwc,cd->bhwd', y * styles_rgb[:, None, None, :], wrgb,
                     precision=lax.Precision.HIGHEST) + params['torgb_bias']
    return y, rgb


# ----------------------------------------------------------------------------- main
if __name__ == "__main__":
    key = jax.random.PRNGKey(0)
    B, C, w_dim, H, img_ch = 2, 32, 32, 16, 3
    W = H
    num_ws = 2   # num_conv (1, since in_channels==0) + num_torgb (1)

    ks = jax.random.split(key, 12)
    params = {
        'const':           jax.random.normal(ks[0], (H, W, C), jnp.float32),
        'conv1_affine_w':  jax.random.normal(ks[1], (C, w_dim), jnp.float32),
        'conv1_affine_b':  jnp.ones((C,), jnp.float32),
        'conv1_weight':    jax.random.normal(ks[2], (C, C, 3, 3), jnp.float32),
        'conv1_bias':      0.1 * jax.random.normal(ks[3], (C,), jnp.float32),
        'noise_strength':  jnp.float32(0.1),
        'noise_const':     jax.random.normal(ks[4], (H, W), jnp.float32),
        'torgb_affine_w':  jax.random.normal(ks[5], (C, w_dim), jnp.float32),
        'torgb_affine_b':  jnp.ones((C,), jnp.float32),
        'torgb_weight':    jax.random.normal(ks[6], (img_ch, C, 1, 1), jnp.float32),
        'torgb_bias':      0.05 * jax.random.normal(ks[7], (img_ch,), jnp.float32),
    }
    ws1 = jax.random.normal(ks[8],  (B, num_ws, w_dim), jnp.float32)
    ws2 = jax.random.normal(ks[9],  (B, num_ws, w_dim), jnp.float32)
    ws3 = jax.random.normal(ks[10], (B, num_ws, w_dim), jnp.float32)

    outs = jax.block_until_ready(tri_synthesis_block(params, ws1, ws2, ws3))
    x_outs, imgs = outs[:3], outs[3:]

    for ws, x_o, img_o in zip((ws1, ws2, ws3), x_outs, imgs):
        x_ref, img_ref = reference_forward(params, ws)
        np.testing.assert_allclose(np.asarray(x_o), np.asarray(x_ref), rtol=2e-2, atol=2e-2)
        np.testing.assert_allclose(np.asarray(img_o), np.asarray(img_ref), rtol=2e-2, atol=2e-2)

    print("KERNEL_OK")
</pallas_src>

<mosaic_0001>
module attributes {stable_mosaic.version = 11 : i64} {
  func.func @tri_block_kernel(%arg0: i32, %arg1: memref<288x128xbf16, #tpu.memory_space<vmem>>, %arg2: memref<192x288xbf16, #tpu.memory_space<vmem>>, %arg3: memref<192x1xf32, #tpu.memory_space<vmem>>, %arg4: memref<1x128xf32, #tpu.memory_space<vmem>>, %arg5: memref<48x192xbf16, #tpu.memory_space<vmem>>, %arg6: memref<48x1xf32, #tpu.memory_space<vmem>>, %arg7: memref<192x128xf32, #tpu.memory_space<vmem>>, %arg8: memref<48x128xf32, #tpu.memory_space<vmem>>) attributes {dimension_semantics = [#tpu.dimension_semantics<parallel>], iteration_bounds = array<i64: 2>, scalar_prefetch = 0 : i64, scratch_operands = 0 : i64, tpu.core_type = #tpu.core_type<tc>, window_params = [{transform_indices = @transform_0, window_bounds = array<i64: 288, 128>}, {pipeline_mode = #tpu.pipeline_mode<synchronous>, transform_indices = @transform_1, window_bounds = array<i64: 192, 288>}, {pipeline_mode = #tpu.pipeline_mode<synchronous>, transform_indices = @transform_2, window_bounds = array<i64: 192, 1>}, {transform_indices = @transform_3, window_bounds = array<i64: 1, 128>}, {pipeline_mode = #tpu.pipeline_mode<synchronous>, transform_indices = @transform_4, window_bounds = array<i64: 48, 192>}, {pipeline_mode = #tpu.pipeline_mode<synchronous>, transform_indices = @transform_5, window_bounds = array<i64: 48, 1>}, {transform_indices = @transform_6, window_bounds = array<i64: 192, 128>}, {transform_indices = @transform_7, window_bounds = array<i64: 48, 128>}]} {
    %c0 = arith.constant 0 : index
    %c0_0 = arith.constant 0 : index
    %0 = vector.load %arg2[%c0, %c0_0] : memref<192x288xbf16, #tpu.memory_space<vmem>>, vector<192x288xbf16>
    %c0_1 = arith.constant 0 : index
    %c0_2 = arith.constant 0 : index
    %1 = vector.load %arg1[%c0_1, %c0_2] : memref<288x128xbf16, #tpu.memory_space<vmem>>, vector<288x128xbf16>
    %cst = arith.constant dense<0.000000e+00> : vector<192x128xf32>
    %2 = tpu.matmul %0, %1, %cst {dimension_numbers = #tpu.dot_dimension_numbers<[1], [0], [0], [1], [0, 0, 1, 1], [], []>} : vector<192x288xbf16>, vector<288x128xbf16>, vector<192x128xf32> -> vector<192x128xf32>
    %c0_3 = arith.constant 0 : index
    %c0_4 = arith.constant 0 : index
    %3 = vector.load %arg3[%c0_3, %c0_4] : memref<192x1xf32, #tpu.memory_space<vmem>>, vector<192x1xf32>
    %4 = vector.broadcast %3 : vector<192x1xf32> to vector<192x128xf32>
    %5 = arith.addf %2, %4 : vector<192x128xf32>
    %c0_5 = arith.constant 0 : index
    %c0_6 = arith.constant 0 : index
    %6 = vector.load %arg4[%c0_5, %c0_6] : memref<1x128xf32, #tpu.memory_space<vmem>>, vector<1x128xf32>
    %7 = vector.broadcast %6 : vector<1x128xf32> to vector<192x128xf32>
    %8 = arith.addf %5, %7 : vector<192x128xf32>
    %cst_7 = arith.constant 0.000000e+00 : f32
    %9 = vector.broadcast %cst_7 : f32 to vector<192x128xf32>
    %10 = arith.cmpf oge, %8, %9 : vector<192x128xf32>
    %cst_8 = arith.constant 2.000000e-01 : f32
    %11 = vector.broadcast %cst_8 : f32 to vector<192x128xf32>
    %12 = arith.mulf %11, %8 : vector<192x128xf32>
    %13 = arith.select %10, %8, %12 : vector<192x128xi1>, vector<192x128xf32>
    %cst_9 = arith.constant 1.41421354 : f32
    %14 = vector.broadcast %cst_9 : f32 to vector<192x128xf32>
    %15 = arith.mulf %13, %14 : vector<192x128xf32>
    %c0_10 = arith.constant 0 : index
    %c0_11 = arith.constant 0 : index
    %16 = vector.load %arg7[%c0_10, %c0_11] : memref<192x128xf32, #tpu.memory_space<vmem>>, vector<192x128xf32>
    tpu.vector_store %arg7[%c0_10, %c0_11], %15 {strides = array<i32>} : memref<192x128xf32, #tpu.memory_space<vmem>>, vector<192x128xf32>,
    %c0_12 = arith.constant 0 : index
    %c0_13 = arith.constant 0 : index
    %17 = vector.load %arg5[%c0_12, %c0_13] : memref<48x192xbf16, #tpu.memory_space<vmem>>, vector<48x192xbf16>
    %18 = arith.truncf %15 : vector<192x128xf32> to vector<192x128xbf16>
    %cst_14 = arith.constant dense<0.000000e+00> : vector<48x128xf32>
    %19 = tpu.matmul %17, %18, %cst_14 {dimension_numbers = #tpu.dot_dimension_numbers<[1], [0], [0], [1], [0, 0, 1, 1], [], []>} : vector<48x192xbf16>, vector<192x128xbf16>, vector<48x128xf32> -> vector<48x128xf32>
    %c0_15 = arith.constant 0 : index
    %c0_16 = arith.constant 0 : index
    %20 = vector.load %arg6[%c0_15, %c0_16] : memref<48x1xf32, #tpu.memory_space<vmem>>, vector<48x1xf32>
    %21 = vector.broadcast %20 : vector<48x1xf32> to vector<48x128xf32>
    %22 = arith.addf %19, %21 : vector<48x128xf32>
    %c0_17 = arith.constant 0 : index
    %c0_18 = arith.constant 0 : index
    %23 = vector.load %arg8[%c0_17, %c0_18] : memref<48x128xf32, #tpu.memory_space<vmem>>, vector<48x128xf32>
    tpu.vector_store %arg8[%c0_17, %c0_18], %22 {strides = array<i32>} : memref<48x128xf32, #tpu.memory_space<vmem>>, vector<48x128xf32>,
    return
  }
  func.func @transform_0(%arg0: i32) -> (i32, i32) {
    %c0_i32 = arith.constant 0 : i32
    %c0_i32_0 = arith.constant 0 : i32
    return %c0_i32, %arg0 : i32, i32
  }
  func.func @transform_1(%arg0: i32) -> (i32, i32) {
    %c0_i32 = arith.constant 0 : i32
    %c0_i32_0 = arith.constant 0 : i32
    %c0_i32_1 = arith.constant 0 : i32
    return %c0_i32, %c0_i32_0 : i32, i32
  }
  func.func @transform_2(%arg0: i32) -> (i32, i32) {
    %c0_i32 = arith.constant 0 : i32
    %c0_i32_0 = arith.constant 0 : i32
    %c0_i32_1 = arith.constant 0 : i32
    return %c0_i32, %c0_i32_0 : i32, i32
  }
  func.func @transform_3(%arg0: i32) -> (i32, i32) {
    %c0_i32 = arith.constant 0 : i32
    %c0_i32_0 = arith.constant 0 : i32
    return %c0_i32, %arg0 : i32, i32
  }
  func.func @transform_4(%arg0: i32) -> (i32, i32) {
    %c0_i32 = arith.constant 0 : i32
    %c0_i32_0 = arith.constant 0 : i32
    %c0_i32_1 = arith.constant 0 : i32
    return %c0_i32, %c0_i32_0 : i32, i32
  }
  func.func @transform_5(%arg0: i32) -> (i32, i32) {
    %c0_i32 = arith.constant 0 : i32
    %c0_i32_0 = arith.constant 0 : i32
    %c0_i32_1 = arith.constant 0 : i32
    return %c0_i32, %c0_i32_0 : i32, i32
  }
  func.func @transform_6(%arg0: i32) -> (i32, i32) {
    %c0_i32 = arith.constant 0 : i32
    %c0_i32_0 = arith.constant 0 : i32
    return %c0_i32, %arg0 : i32, i32
  }
  func.func @transform_7(%arg0: i32) -> (i32, i32) {
    %c0_i32 = arith.constant 0 : i32
    %c0_i32_0 = arith.constant 0 : i32
    return %c0_i32, %arg0 : i32, i32
  }
}

</mosaic_0001>

<bundles_post_ra>
// kernel: tpu_custom_call.1
= control target key start
LH: loop header
LB: loop body
LE: loop exit
PB: predicated region body
PF: predicated region fallthrough
CT: control target
= control target key end

     0   :  { %s2688_s0 = inlined_call_operand.hbm [shape: bf16[288,256], index: 0, kind: input, shape index: {}]   ;;  %s2689_s1 = inlined_call_operand.hbm [shape: bf16[192,288], index: 1, kind: input, shape index: {}]   ;;  %s2690_s2 = inlined_call_operand.vmem [shape: f32[192,1], index: 2, kind: input, shape index: {}]   ;;  %s2691_s3 = inlined_call_operand.vmem [shape: f32[1,256], index: 3, kind: input, shape index: {}]   ;;  %s2692_s4 = inlined_call_operand.vmem [shape: bf16[48,192], index: 4, kind: input, shape index: {}]   ;;  %s2693_s5 = inlined_call_operand.vmem [shape: f32[48,1], index: 5, kind: input, shape index: {}]   ;;  %s2694_s6 = inlined_call_operand.hbm [shape: f32[192,256], index: 6, kind: output, shape index: {0}]   ;;  %s2695_s7 = inlined_call_operand.hbm [shape: f32[48,256], index: 7, kind: output, shape index: {1}]  }
   0x1   :  { %2697 = sst [smem:[#allocation16_spill]] %s2689_s1 }
   0x2   :  { %13 = vsyncpa [#allocation3], 0 }
   0x3   :  { %15 = vsyncpa [#allocation3 + $0x1], 0 }
   0x4   :  { %16 = vsyncpa [#allocation6], 0 }
   0x5   :  { %17 = vsyncpa [#allocation4], 0 }
   0x6   :  { %19 = vsyncpa [#allocation4 + $0x1], 0 }
   0x7   :  { %20 = vsyncpa [#allocation9], 0 }
   0x8   :  { %22 = vsyncpa [#allocation9 + $0x1], 0  ;;  %s2174_s24 = smov 0   ;;  %s2176_s25 = smov 0  }
   0x9   :  { %s2178_s26 = smov 0   ;;  %s2180_s27 = smov 0  }
   0xa LB: > { %2698 = sst [smem:[#allocation14_spill]] %s2118_s26  ;;  %s2195_s28 = sadd.s32 4294967295, %s2122_s27   ;;  %s2122_s27 = sphi %s2180_s27, %s2711_s27   ;;  %s2118_s26 = sphi %s2178_s26, %s2708_s26   ;;  %s2114_s25 = sphi %s2176_s25, %s2710_s25   ;;  %s2110_s24 = sphi %s2174_s24, %s2709_s24  }
   0xb   : > { %s1555_s29 = sadd.s32 4294967294, %s2122_s27   ;;  %p48_p0 = scmp.ne.s32.totalorder %s2114_s25, %s2110_s24 }
   0xc   : > { %p49_p1 = scmp.eq.s32.totalorder %s2195_s28, 0  ;;  %p182_p2 = scmp.eq.s32.totalorder %s2195_s28, 1 }
   0xd   : > { %p188_p3 = scmp.eq.s32.totalorder %s1555_s29, 1  ;;  %p1556_p5 = scmp.ge.s32.totalorder %s2122_s27, 1 }
   0xe   : > { %p2204_p4 = por %p49_p1, %p48_p0  ;;  %p221_p7 = scmp.lt.s32.totalorder %s2122_s27, 3 }
   0xf   : > { %p2209_p6 = por %p188_p3, %p48_p0  ;;  %s2701_s1 = sld [smem:[#allocation16_spill]] }
  0x10   : > { %p2217_p8 = pnand %p1556_p5, %p221_p7  ;;  %s2124_s13 = smov [#allocation5]  }
  0x11   : > { %s234_s14 = sshll.u32 %s2124_s13, 4  ;;  %s2227_s15 = sadd.s32 1, %s2122_s27   ;;  %s235_s14 = int_to_ptr.vmem [resolvable:$true] %s234_s14 }
  0x12   : > { %p1895_p9 = pneg %p2217_p8  ;;  %s2125_s16 = smov 192  }
  0x13   : > { %s2126_s17 = smov 12   ;;  %s32_s18 = ssub.s32 %s2122_s27, %s2227_s15 }
  0x14   : > { %p1896_p10 = pnand %p1895_p9, %p49_p1  ;;  %s35_s19 = sadd.s32 1, %s2118_s26 }
  0x15   : > { %s232_s11 = sshll.u32 %s2701_s1, 4  ;;  %p33_p12 = scmp.eq.s32.totalorder %s32_s18, 0  ;;  %s233_s11 = int_to_ptr.hbm [resolvable:$true] %s232_s11 }
  0x16   : > { %1898 = dma.hbm_to_vmem [thread:$0]  (!%p1896_p10), %s233_s11, 4608, %s235_s14, [#allocation6], %s2125_s16, %s2125_s16, %s2126_s17  }
  0x17   : > { %p42_p13 = scmp.ne.s32.totalorder %s2118_s26, %s2114_s25  ;;  %p43_p0 = scmp.eq.s32.totalorder %s2122_s27, 0 }
  0x18   : > { %p1911_p3 = scmp.lt.s32.totalorder %s2122_s27, 2  ;;  %s257_s22 = sand.u32 1, %s2118_s26  }
  0x19   : > { %s2237_s20 = scalar_select %p33_p12, %s2118_s26, %s35_s19  }
  0x1a   : > { %p44_p5 = por %p43_p0, %p42_p13  ;;  %p2241_p7 = por %p182_p2, %p42_p13 }
  0x1b   : > { %2703 = sst [smem:[#allocation15_spill]] %s2237_s20  ;;  %s1559_s23 = sshll.u32 %s2122_s27, 2 }
  0x1c   : > { %s1881_s29 = smul.u32 144, %s257_s22  ;;  %s265_s11 = scalar_lea.hbm %s2688_s0, %s1559_s23 }
  0x1d   : > { %p2250_p9 = pnand %p1911_p3, %p44_p5  ;;  %s266_s14 = sshll.u32 %s265_s11, 4  ;;  %s267_s14 = int_to_ptr.hbm [resolvable:$true] %s266_s14 }
  0x1e   : > { %s261_s16 = scalar_lea.vmem [#allocation2], %s1881_s29  ;;  %s258_s18 = scalar_lea.sflag [#allocation3], %s257_s22 }
  0x1f   : > { %s268_s17 = sshll.u32 %s261_s16, 4  ;;  %s1990_s19 = sshra.s32 %s267_s14, 4  ;;  %s269_s17 = int_to_ptr.vmem [resolvable:$true] %s268_s17  ;;  %s1991_s19 = int_to_ptr.hbm [resolvable:$true] %s1990_s19 }
  0x20   : > { %s1992_s1 = scalar_lea.hbm %s1991_s19, 144  ;;  %p1994_p10 = pneg %p2250_p9 }
  0x21   : > { %p1993_p2 = scmp.ne.s32.totalorder %s1991_s19, %s1992_s1  ;;  %s1997_s10 = scalar_lea.hbm %s2688_s0, 288 }
  0x22   : > { %p1998_p0 = scmp.lt.s32.totalorder %s1991_s19, %s2688_s0  ;;  %p1999_p3 = scmp.lt.s32.totalorder %s1997_s10, %s1992_s1 }
  0x23   : > { %p1995_p12 = pnand %p1994_p10, %p1993_p2 }
  0x24   : > { %p2000_p5 = por %p1999_p3, %p1998_p0 }
  0x25   : > { %p1996_p13 = pneg %p1995_p12 }
  0x27   : > { %p2001_p11 = pnand %p2000_p5, %p1996_p13 }
  0x29   : > { %2004 = shalt.err (!%p2001_p11)
}
  0x2a   : > { %s2127_s22 = smov 128   ;;  %s2128_s29 = smov 64  }
  0x2b   : > { %s2129_s11 = smov 4   ;;  %286 = sbr.rel (%p2217_p8) target bundleno = 602 (0x25a), region = 44 }
  0x2c   : > { %1902 = dma.hbm_to_vmem [thread:$0]  (!%p2250_p9), %s267_s14, 2304, %s269_s17, %s258_s18, %s2127_s22, %s2128_s29, %s2129_s11  }
  0x2d   : > { %s2267_s16 = sand.u32 (!%p2217_p8), 1, %s2114_s25  }
  0x2e   : > { %s1882_s26 = smul.u32 (!%p2217_p8), 144, %s2267_s16  ;;  %s289_s1 = scalar_lea.sflag (!%p2217_p8), [#allocation3], %s2267_s16 }
  0x30   : > { %s2271_s20 = scalar_lea.vmem [#allocation2], %s1882_s26 }
  0x31   : > { %2093 = dma.done.wait (%p2204_p4), %s289_s1, 2304  }
  0x32   : > { %2095 = vsyncadd (%p2204_p4), %s289_s1, 4294964992 }
  0x33   : > { %2097 = dma.done.wait (%p49_p1), [#allocation6], 4608  }
  0x34   : > { %2099 = vsyncadd (%p49_p1), [#allocation6], 4294962688  ;;  %v2130_v0 = vmov 0   ;;  %v1864_v1 = vld [vmem:[%s2271_s20 + $0x38] sm:$0xff]  ;;  %v1863_v3 = vld [vmem:[%s2271_s20 + $0x30] sm:$0xff]  ;;  %vm857_vm0 = vcmask 261120  }
  0x35   : > { %1956 = vset.pattern.permute.xlu0 %v2130_v0  ;;  %1958 = vset.pattern.permute.xlu2 %v2130_v0  ;;  %v1872_v2 = vld [vmem:[%s2271_s20 + $0x78] sm:$0xff]  ;;  %v1871_v4 = vld [vmem:[%s2271_s20 + $0x70] sm:$0xff]  ;;  %v1874_v6 = vld [vmem:[%s2271_s20 + $0x88] sm:$0xff]  ;;  %p337_p1 = scmp.lt.s32.totalorder %s2195_s28, 1  ;;  %s1883_s19 = smul.u32 192, %s2267_s16 }
  0x36   : > { %1957 = vset.pattern.permute.xlu1 %v2130_v0  ;;  %894 = vmatpush.bf16.msra.mxu0 %v1864_v1  ;;  %v439_v5 = vld [vmem:[%s2690_s2 + $0x70] sm:$0xff]  ;;  %v1572_v8 = vld [vmem:[#allocation5 + $0x8] sm:$0xf]  ;;  %v440_v12 = vld [vmem:[%s2690_s2 + $0x78] sm:$0xff]  ;;  %s1817_s13 = sshll.u32 %s2195_s28, 3  ;;  %s2040_s11 = scalar_lea.hbm %s2694_s6, 384 }
  0x37   : > { %963 = vmatpush.bf16.msra.mxu1 %v1872_v2  ;;  %521 = vperm.xlu0 %1956, %v439_v5   ;;  %v1873_v7 = vld [vmem:[%s2271_s20 + $0x80] sm:$0xff]  ;;  %v1862_v10 = vld [vmem:[%s2271_s20 + $0x28] sm:$0xff]  ;;  %v1860_v18 = vld [vmem:[%s2271_s20 + $0x18] sm:$0xff]  ;;  %s2339_s9 = scalar_select %p337_p1, %s2195_s28, 1 }
  0x38   : > { %1038 = vmatpush.bf16.msra.mxu2 %v1874_v6  ;;  %v1823_v9 = vld [vmem:[#allocation5 + $0x10] sm:$0xf0]  ;;  %v1870_v11 = vld [vmem:[%s2271_s20 + $0x68] sm:$0xff]  ;;  %v437_v14 = vld [vmem:[%s2690_s2 + $0x60] sm:$0xff] }
  0x39   : > { %v1573_v13 = vor.u32 %v1823_v9, %v1572_v8  ;;  %v435_v15 = vld [vmem:[%s2690_s2 + $0x50] sm:$0xff]  ;;  %511 = vperm.xlu1 %1957, %v437_v14   ;;  %v1868_v19 = vld [vmem:[%s2271_s20 + $0x58] sm:$0xff]  ;;  %v433_v20 = vld [vmem:[%s2690_s2 + $0x40] sm:$0xff]  ;;  %s339_s26 = scalar_lea.vmem %s2691_s3, %s2339_s9  ;;  %s2441_s9 = scalar_lea.vmem [#allocation7], %s1883_s19 }
  0x3a   : > { %895 = vmatpush.bf16.msra.mxu0 %v1863_v3  ;;  %v1861_v16 = vld [vmem:[%s2271_s20 + $0x20] sm:$0xff]  ;;  %501 = vperm.xlu2 %1958, %v435_v15   ;;  %v438_v21 = vld [vmem:[%s2690_s2 + $0x68] sm:$0xff]  ;;  %v436_v22 = vld [vmem:[%s2690_s2 + $0x58] sm:$0xff]  ;;  %s1411_s18 = sshll.u32 %s2441_s9, 4  ;;  %s1412_s18 = int_to_ptr.vmem [resolvable:$true] %s1411_s18 }
  0x3b   : > { %964 = vmatpush.bf16.msra.mxu1 %v1871_v4  ;;  %v1869_v17 = vld [vmem:[%s2271_s20 + $0x60] sm:$0xff]  ;;  %v1859_v23 = vld [vmem:[%s2271_s20 + $0x10] sm:$0xff]  ;;  %v1826_v26 = vld [vmem:[#allocation5 + $0x28] sm:$0xf0] }
  0x3c   : > { %1039 = vmatpush.bf16.msra.mxu2 %v1873_v7  ;;  %v1867_v24 = vld [vmem:[%s2271_s20 + $0x50] sm:$0xff]  ;;  %v1858_v27 = vld [vmem:[%s2271_s20 + $0x8] sm:$0xff]  ;;  %v1857_v29 = vld [vmem:[%s2271_s20] sm:$0xff] }
  0x3d   : > { %v1584_v25 = vld [vmem:[#allocation5 + $0x20] sm:$0xf]  ;;  %v1866_v28 = vld [vmem:[%s2271_s20 + $0x48] sm:$0xff]  ;;  %v431_v35 = vld [vmem:[%s2690_s2 + $0x30] sm:$0xff] }
  0x3e   : > { %896 = vmatpush.bf16.msra.mxu0 %v1862_v10  ;;  %v432_v30 = vld [vmem:[%s2690_s2 + $0x38] sm:$0xff]  ;;  %v1585_v31 = vor.u32 %v1826_v26, %v1584_v25  ;;  %v434_v32 = vld [vmem:[%s2690_s2 + $0x48] sm:$0xff]  ;;  %v1865_v33 = vld [vmem:[%s2271_s20 + $0x40] sm:$0xff]  ;;  %s1410_s20 = scalar_lea.hbm %s2694_s6, %s1817_s13 }
  0x3f   : > { %965 = vmatpush.bf16.msra.mxu1 %v1870_v11  ;;  %526 = vperm.xlu0 %1956, %v440_v12   ;;  %v1564_v34 = vld [vmem:[#allocation5] sm:$0xf]  ;;  %v1822_v36 = vld [vmem:[#allocation5 + $0x8] sm:$0xf0]  ;;  %v1821_v37 = vld [vmem:[#allocation5 + $0x4] sm:$0xf] }
  0x40   : > { %1778 = vmatmul.msk.bf16.vlgmr.msra.gmra.mxu2 %vm857_vm0, %v1573_v13  ;;  %v1566_v38 = vld [vmem:[#allocation5 + $0xc] sm:$0xf0]  ;;  %v1565_v39 = vor.u32 %v1822_v36, %v1564_v34  ;;  %v429_v42 = vld [vmem:[%s2690_s2 + $0x20] sm:$0xff]  ;;  %v430_v43 = vld [vmem:[%s2690_s2 + $0x28] sm:$0xff]  ;;  %s1413_s19 = sshll.u32 %s1410_s20, 4  ;;  %s1414_s19 = int_to_ptr.hbm [resolvable:$true] %s1413_s19 }
  0x41   : > { %516 = vperm.xlu1 %1957, %v438_v21   ;;  %v1569_v40 = vor.u32 %v1821_v37, %v1566_v38  ;;  %v427_v41 = vld [vmem:[%s2690_s2 + $0x10] sm:$0xff]  ;;  %v1596_v44 = vld [vmem:[#allocation5 + $0x38] sm:$0xf]  ;;  %v1829_v45 = vld [vmem:[#allocation5 + $0x40] sm:$0xf0]  ;;  %s2034_s23 = sshra.s32 %s1414_s19, 4  ;;  %s2035_s23 = int_to_ptr.hbm [resolvable:$true] %s2034_s23 }
  0x42   : > { %897 = vmatpush.bf16.msra.mxu0 %v1861_v16  ;;  %506 = vperm.xlu2 %1958, %v436_v22   ;;  %v426_v46 = vld [vmem:[%s2690_s2 + $0x8] sm:$0xff]  ;;  %v1597_v47 = vor.u32 %v1829_v45, %v1596_v44  ;;  %v428_v48 = vld [vmem:[%s2690_s2 + $0x18] sm:$0xff]  ;;  %v425_v50 = vld [vmem:[%s2690_s2] sm:$0xff]  ;;  %s2036_s10 = scalar_lea.hbm %s2035_s23, 192  ;;  %p2041_p9 = scmp.lt.s32.totalorder %s2035_s23, %s2694_s6 }
  0x43   : > { %966 = vmatpush.bf16.msra.mxu1 %v1869_v17  ;;  %v1576_v49 = vld [vmem:[#allocation5 + $0x18] sm:$0xf]  ;;  %v1825_v51 = vld [vmem:[#allocation5 + $0x20] sm:$0xf0]  ;;  %v1824_v52 = vld [vmem:[#allocation5 + $0x1c] sm:$0xf]  ;;  %p2037_p4 = scmp.ne.s32.totalorder %s2035_s23, %s2036_s10  ;;  %p2042_p2 = scmp.lt.s32.totalorder %s2040_s11, %s2036_s10 }
  0x44   : > { %v1578_v53 = vld [vmem:[#allocation5 + $0x24] sm:$0xf0]  ;;  %v1577_v54 = vor.u32 %v1825_v51, %v1576_v49  ;;  %v1608_v56 = vld [vmem:[#allocation5 + $0x50] sm:$0xf]  ;;  %v1832_v57 = vld [vmem:[#allocation5 + $0x58] sm:$0xf0] }
  0x45   : > { %v1581_v55 = vor.u32 %v1824_v52, %v1578_v53  ;;  %v1609_v58 = vor.u32 %v1832_v57, %v1608_v56  ;;  %v1588_v59 = vld [vmem:[#allocation5 + $0x30] sm:$0xf]  ;;  %v1828_v60 = vld [vmem:[#allocation5 + $0x38] sm:$0xf0]  ;;  %v1827_v61 = vld [vmem:[#allocation5 + $0x34] sm:$0xf]  ;;  %p2038_p8 = pnand %p2037_p4, %p2241_p7  ;;  %p2043_p10 = por %p2042_p2, %p2041_p9 }
  0x46   : > { %898 = vmatpush.bf16.msra.mxu0 %v1860_v18  ;;  %v1590_v62 = vld [vmem:[#allocation5 + $0x3c] sm:$0xf0]  ;;  %v1589_v63 = vor.u32 %v1828_v60, %v1588_v59  ;;  %v1620_v1 = vld [vmem:[#allocation5 + $0x68] sm:$0xf]  ;;  %v1835_v2 = vld [vmem:[#allocation5 + $0x70] sm:$0xf0] }
  0x47   : > { %967 = vmatpush.bf16.msra.mxu1 %v1868_v19  ;;  %491 = vperm.xlu0 %1956, %v433_v20   ;;  %v1593_v0 = vor.u32 %v1827_v61, %v1590_v62  ;;  %v1621_v3 = vor.u32 %v1835_v2, %v1620_v1  ;;  %v1600_v4 = vld [vmem:[#allocation5 + $0x48] sm:$0xf]  ;;  %v1831_v5 = vld [vmem:[#allocation5 + $0x50] sm:$0xf0]  ;;  %v1830_v6 = vld [vmem:[#allocation5 + $0x4c] sm:$0xf]  ;;  %p2039_p11 = pneg %p2038_p8 }
  0x48   : > { %v1602_v7 = vld [vmem:[#allocation5 + $0x54] sm:$0xf0]  ;;  %v1601_v8 = vor.u32 %v1831_v5, %v1600_v4  ;;  %v1632_v10 = vld [vmem:[#allocation5 + $0x80] sm:$0xf]  ;;  %v1838_v11 = vld [vmem:[#allocation5 + $0x88] sm:$0xf0] }
  0x49   : > { %496 = vperm.xlu1 %1957, %v434_v32   ;;  %v1605_v9 = vor.u32 %v1830_v6, %v1602_v7  ;;  %v1633_v12 = vor.u32 %v1838_v11, %v1632_v10  ;;  %v1612_v13 = vld [vmem:[#allocation5 + $0x60] sm:$0xf]  ;;  %v1834_v14 = vld [vmem:[#allocation5 + $0x68] sm:$0xf0]  ;;  %v1833_v15 = vld [vmem:[#allocation5 + $0x64] sm:$0xf]  ;;  %p2044_p12 = pnand %p2043_p10, %p2039_p11 }
  0x4a   : > { %899 = vmatpush.bf16.msra.mxu0 %v1859_v23  ;;  %481 = vperm.xlu2 %1958, %v431_v35   ;;  %v1614_v16 = vld [vmem:[#allocation5 + $0x6c] sm:$0xf0]  ;;  %v1613_v18 = vor.u32 %v1834_v14, %v1612_v13  ;;  %v445_v20 = vld [vmem:[%s2690_s2 + $0xa0] sm:$0xff]  ;;  %v446_v21 = vld [vmem:[%s2690_s2 + $0xa8] sm:$0xff] }
  0x4b   : > { %968 = vmatpush.bf16.msra.mxu1 %v1867_v24  ;;  %v447_v17 = vld [vmem:[%s2690_s2 + $0xb0] sm:$0xff]  ;;  %v1617_v19 = vor.u32 %v1833_v15, %v1614_v16  ;;  %v1644_v22 = vld [vmem:[#allocation5 + $0x98] sm:$0xf]  ;;  %v1841_v23 = vld [vmem:[#allocation5 + $0xa0] sm:$0xf0] }
  0x4c   : > { %v444_v24 = vld [vmem:[%s2690_s2 + $0x98] sm:$0xff]  ;;  %v1645_v25 = vor.u32 %v1841_v23, %v1644_v22  ;;  %v1268_v34 = vld [vmem:[%s2693_s5 + $0x8] sm:$0xff]  ;;  %v1656_v37 = vld [vmem:[#allocation5 + $0xb0] sm:$0xf] }
  0x4d   : > { %v1624_v26 = vld [vmem:[#allocation5 + $0x78] sm:$0xf]  ;;  %v1844_v38 = vld [vmem:[#allocation5 + $0xb8] sm:$0xf0]  ;;  %v1839_v44 = vld [vmem:[#allocation5 + $0x94] sm:$0xf] }
  0x4e   : > { %900 = vmatpush.bf16.msra.mxu0 %v1858_v27  ;;  %v1837_v27 = vld [vmem:[#allocation5 + $0x80] sm:$0xf0]  ;;  %v1638_v45 = vld [vmem:[#allocation5 + $0x9c] sm:$0xf0]  ;;  %v443_v51 = vld [vmem:[%s2690_s2 + $0x90] sm:$0xff] }
  0x4f   : > { %969 = vmatpush.bf16.msra.mxu1 %v1866_v28  ;;  %486 = vperm.xlu0 %1956, %v432_v30   ;;  %v1836_v28 = vld [vmem:[#allocation5 + $0x7c] sm:$0xf]  ;;  %v441_v30 = vld [vmem:[%s2690_s2 + $0x80] sm:$0xff]  ;;  %v1668_v52 = vld [vmem:[#allocation5 + $0xc8] sm:$0xf] }
  0x50   : > { %1779 = vmatmul.msk.bf16.gmra.mxu2 %vm857_vm0, %v1585_v31  ;;  %v1625_v31 = vor.u32 %v1837_v27, %v1624_v26  ;;  %v1847_v53 = vld [vmem:[#allocation5 + $0xd0] sm:$0xf0]  ;;  %v1842_v60 = vld [vmem:[#allocation5 + $0xac] sm:$0xf]  ;;  %v1650_v61 = vld [vmem:[#allocation5 + $0xb4] sm:$0xf0] }
  0x51   : > { %471 = vperm.xlu1 %1957, %v429_v42   ;;  %v1636_v42 = vld [vmem:[#allocation5 + $0x90] sm:$0xf]  ;;  %v1669_v57 = vor.u32 %v1847_v53, %v1668_v52  ;;  %v1843_v59 = vld [vmem:[#allocation5 + $0xb0] sm:$0xf0]  ;;  %v1680_v5 = vld [vmem:[#allocation5 + $0xe0] sm:$0xf] }
  0x52   : > { %901 = vmatpush.bf16.msra.mxu0 %v1857_v29  ;;  %476 = vperm.xlu2 %1958, %v430_v43   ;;  %v1626_v29 = vld [vmem:[#allocation5 + $0x84] sm:$0xf0]  ;;  %v1840_v43 = vld [vmem:[#allocation5 + $0x98] sm:$0xf0]  ;;  %v1269_v2 = vld [vmem:[%s2693_s5 + $0x10] sm:$0xff] }
  0x53   : > { %970 = vmatpush.bf16.msra.mxu1 %v1865_v33  ;;  %v1629_v32 = vor.u32 %v1836_v28, %v1626_v29  ;;  %v1267_v33 = vld [vmem:[%s2693_s5] sm:$0xff]  ;;  %v1850_v6 = vld [vmem:[#allocation5 + $0xe8] sm:$0xf0]  ;;  %v1662_v15 = vld [vmem:[#allocation5 + $0xcc] sm:$0xf0] }
  0x54   : > { %v1681_v10 = vor.u32 %v1850_v6, %v1680_v5  ;;  %v1660_v11 = vld [vmem:[#allocation5 + $0xc0] sm:$0xf]  ;;  %v1846_v13 = vld [vmem:[#allocation5 + $0xc8] sm:$0xf0]  ;;  %v1845_v14 = vld [vmem:[#allocation5 + $0xc4] sm:$0xf] }
  0x55   : > { %902 = vmatmul.bf16.vlgmr.msra.gmra.mxu0 %v1565_v39  ;;  %v448_v39 = vld [vmem:[%s2690_s2 + $0xb8] sm:$0xff]  ;;  %v1704_v6 = vld [vmem:[#allocation5 + $0x110] sm:$0xf] }
  0x56   : > { %971 = vmatmul.bf16.vlgmr.msra.gmra.mxu1 %v1569_v40  ;;  %v1270_v40 = vld [vmem:[%s2693_s5 + $0x18] sm:$0xff] }
  0x57   : > { %461 = vperm.xlu0 %1956, %v427_v41   ;;  %v1657_v41 = vor.u32 %v1844_v38, %v1656_v37  ;;  %v1692_v29 = vld [vmem:[#allocation5 + $0xf8] sm:$0xf] }
  0x59   : > { %466 = vperm.xlu1 %1957, %v428_v48   ;;  %v1641_v48 = vor.u32 %v1839_v44, %v1638_v45  ;;  %v1848_v44 = vld [vmem:[#allocation5 + $0xdc] sm:$0xf]  ;;  %v1674_v45 = vld [vmem:[#allocation5 + $0xe4] sm:$0xf0] }
  0x5a   : > { %451 = vperm.xlu2 %1958, %v425_v50   ;;  %v1677_v52 = vor.u32 %v1848_v44, %v1674_v45 }
  0x5f   : > { %456 = vperm.xlu0 %1956, %v426_v46   ;;  %v1271_v46 = vld [vmem:[%s2693_s5 + $0x20] sm:$0xff] }
  0x60   : > { %1780 = vmatmul.msk.bf16.gmra.mxu2 %vm857_vm0, %v1597_v47  ;;  %v1637_v47 = vor.u32 %v1840_v43, %v1636_v42 }
  0x61   : > { %561 = vperm.xlu1 %1957, %v447_v17   ;;  %v1661_v17 = vor.u32 %v1846_v13, %v1660_v11 }
  0x62   : > { %566 = vperm.xlu2 %1958, %v448_v39  }
  0x65   : > { %907 = vmatmul.bf16.gmra.mxu0 %v1577_v54 }
  0x66   : > { %976 = vmatmul.bf16.gmra.mxu1 %v1581_v55  ;;  %v442_v55 = vld [vmem:[%s2690_s2 + $0x88] sm:$0xff] }
  0x67   : > { %551 = vperm.xlu0 %1956, %v445_v20  }
  0x69   : > { %556 = vperm.xlu1 %1957, %v446_v21  }
  0x6a   : > { %541 = vperm.xlu2 %1958, %v443_v51  }
  0x6f   : > { %546 = vperm.xlu0 %1956, %v444_v24  }
  0x70   : > { %1781 = vmatmul.msk.bf16.gmra.mxu2 %vm857_vm0, %v1609_v58  ;;  %v1648_v58 = vld [vmem:[#allocation5 + $0xa8] sm:$0xf] }
  0x71   : > { %531 = vperm.xlu1 %1957, %v441_v30   ;;  %v1853_v30 = vld [vmem:[#allocation5 + $0x100] sm:$0xf0] }
  0x72   : > { %536 = vperm.xlu2 %1958, %v442_v55   ;;  %v1693_v38 = vor.u32 %v1853_v30, %v1692_v29 }
  0x75   : > { %912 = vmatmul.bf16.gmra.mxu0 %v1589_v63  ;;  %v1649_v63 = vor.u32 %v1843_v59, %v1648_v58 }
  0x76   : > { %981 = vmatmul.bf16.gmra.mxu1 %v1593_v0  ;;  %v1653_v0 = vor.u32 %v1842_v60, %v1650_v61 }
  0x77   : > { %1275 = vperm.xlu0 %1956, %v1267_v33  }
  0x79   : > { %1280 = vperm.xlu1 %1957, %v1268_v34  }
  0x7a   : > { %1285 = vperm.xlu2 %1958, %v1269_v2  }
  0x7f   : > { %1290 = vperm.xlu0 %1956, %v1270_v40   ;;  %v1672_v40 = vld [vmem:[#allocation5 + $0xd8] sm:$0xf] }
  0x80   : > { %1782 = vmatmul.msk.bf16.gmra.mxu2 %vm857_vm0, %v1621_v3 }
  0x81   : > { %1295 = vperm.xlu1 %1957, %v1271_v46  }
  0x85   : > { %917 = vmatmul.bf16.gmra.mxu0 %v1601_v8 }
  0x86   : > { %986 = vmatmul.bf16.gmra.mxu1 %v1605_v9  ;;  %v1272_v9 = vld [vmem:[%s2693_s5 + $0x28] sm:$0xff] }
  0x87   : > { %1300 = vperm.xlu2 %1958, %v1272_v9  }
  0x90   : > { %1783 = vmatmul.msk.bf16.gmra.mxu2 %vm857_vm0, %v1633_v12 }
  0x94   : > { %v2383_v35 = vpop.permute.xlu2 %501 }
  0x95   : > { %922 = vmatmul.bf16.gmra.mxu0 %v1613_v18  ;;  %v1665_v18 = vor.u32 %v1845_v14, %v1662_v15 }
  0x96   : > { %991 = vmatmul.bf16.gmra.mxu1 %v1617_v19 }
  0x9c   : > { %v2399_v50 = vpop.permute.xlu2 %506 }
  0xa0   : > { %1784 = vmatmul.msk.bf16.gmra.mxu2 %vm857_vm0, %v1645_v25  ;;  %v2434_v25 = vld [vmem:[%s339_s26] ss:$0 sm:$0xff]  ;;  %s1395_s26 = scalar_lea.sflag [#allocation4], %s2267_s16 }
  0xa4   : > { %v2409_v56 = vpop.permute.xlu2 %481 }
  0xa5   : > { %927 = vmatmul.bf16.gmra.mxu0 %v1625_v31 }
  0xa6   : > { %996 = vmatmul.bf16.gmra.mxu1 %v1629_v32 }
  0xa9   : > { %v2385_v36 = vpop.permute.xlu0 %521 }
  0xab   : > { %v2411_v62 = vpop.permute.xlu1 %511 }
  0xac   : > { %v2419_v4 = vpop.permute.xlu2 %476 }
  0xb0   : > { %1785 = vmatmul.msk.bf16.gmra.mxu2 %vm857_vm0, %v1657_v41  ;;  %v1849_v41 = vld [vmem:[#allocation5 + $0xe0] sm:$0xf0] }
  0xb1   : > { %v2397_v49 = vpop.permute.xlu0 %526  ;;  %v1673_v51 = vor.u32 %v1849_v41, %v1672_v40 }
  0xb3   : > { %v2421_v7 = vpop.permute.xlu1 %516 }
  0xb4   : > { %v452_v16 = vpop.permute.xlu2 %451 }
  0xb5   : > { %932 = vmatmul.bf16.gmra.mxu0 %v1637_v47 }
  0xb6   : > { %1001 = vmatmul.bf16.gmra.mxu1 %v1641_v48 }
  0xb9   : > { %v2404_v54 = vpop.permute.xlu0 %491 }
  0xbb   : > { %v2427_v23 = vpop.permute.xlu1 %496 }
  0xc0   : > { %1786 = vmatmul.msk.bf16.gmra.mxu2 %vm857_vm0, %v1669_v57 }
  0xc1   : > { %v2417_v3 = vpop.permute.xlu0 %486 }
  0xc3   : > { %v1041_v1 = vpop.f32.mrf.mxu2  ;;  %v472_v43 = vpop.permute.xlu1 %471 }
  0xc5   : > { %937 = vmatmul.bf16.gmra.mxu0 %v1649_v63 }
  0xc6   : > { %1006 = vmatmul.bf16.gmra.mxu1 %v1653_v0 }
  0xc9   : > { %v462_v12 = vpop.permute.xlu0 %461 }
  0xcb   : > { %v1043_v8 = vpop.f32.mrf.mxu2 }
  0xd0   : > { %1787 = vmatmul.msk.bf16.gmra.mxu2 %vm857_vm0, %v1681_v10 }
  0xd1   : > { %v457_v27 = vpop.permute.xlu0 %456 }
  0xd2   : > { %v903_v19 = vpop.f32.mrf.mxu0 }
  0xd3   : > { %v972_v20 = vpop.f32.mrf.mxu1  ;;  %v904_v21 = vadd.f32 %v903_v19, %v452_v16  ;;  %v1046_v22 = vpop.f32.mrf.mxu2  ;;  %v1684_v16 = vld [vmem:[#allocation5 + $0xf0] sm:$0xf]  ;;  %v1851_v19 = vld [vmem:[#allocation5 + $0xf4] sm:$0xf] }
  0xd5   : > { %v973_v24 = vadd.f32 %v972_v20, %v904_v21  ;;  %942 = vmatmul.bf16.gmra.mxu0 %v1661_v17  ;;  %v1852_v17 = vld [vmem:[#allocation5 + $0xf8] sm:$0xf0]  ;;  %v1686_v20 = vld [vmem:[#allocation5 + $0xfc] sm:$0xf0] }
  0xd6   : > { %1011 = vmatmul.bf16.gmra.mxu1 %v1665_v18 }
  0xd7   : > { %v1042_v26 = vadd.f32 %v1041_v1, %v973_v24  ;;  %v467_v1 = vpop.permute.xlu1 %466 }
  0xd9   : > { %v1105_v28 = vadd.f32 %v2434_v25, %v1042_v26  ;;  %v1685_v26 = vor.u32 %v1852_v17, %v1684_v16 }
  0xda   : > { %v905_v31 = vpop.f32.mrf.mxu0 }
  0xdb   : > { %v974_v32 = vpop.f32.mrf.mxu1  ;;  %v906_v33 = vadd.f32 %v905_v31, %v457_v27  ;;  %v1048_v34 = vpop.f32.mrf.mxu2  ;;  %vm1129_vm1 = vcmp.ge.f32.partialorder %v1105_v28, 0.0  ;;  %v1153_v37 = vmul.f32 0.2, %v1105_v28  ;;  %v1689_v27 = vor.u32 %v1851_v19, %v1686_v20 }
  0xdd   : > { %v975_v39 = vadd.f32 %v974_v32, %v906_v33  ;;  %v1177_v42 = vsel %vm1129_vm1, %v1105_v28, %v1153_v37 }
  0xde   : > { %v2438_v46 = vmul.f32 1.4142135, %v1177_v42 }
  0xdf   : > { %v1044_v47 = vadd.f32 %v1043_v8, %v975_v39  ;;  %v1856_v8 = vld [vmem:[#allocation5 + $0x118] sm:$0xf0] }
  0xe0   : > { %1788 = vmatmul.msk.bf16.gmra.mxu2 %vm857_vm0, %v1693_v38  ;;  %1225 = vst [vmem:[%s2441_s9] sm:$0xff] %v2438_v46  ;;  %v1705_v14 = vor.u32 %v1856_v8, %v1704_v6 }
  0xe1   : > { %v1106_v48 = vadd.f32 %v2434_v25, %v1044_v47 }
  0xe2   : > { %v908_v53 = vpop.f32.mrf.mxu0 }
  0xe3   : > { %v977_v55 = vpop.f32.mrf.mxu1  ;;  %v909_v57 = vadd.f32 %v908_v53, %v462_v12  ;;  %v1051_v58 = vpop.f32.mrf.mxu2  ;;  %vm1130_vm2 = vcmp.ge.f32.partialorder %v1106_v48, 0.0  ;;  %v1154_v59 = vmul.f32 0.2, %v1106_v48  ;;  %v1854_v53 = vld [vmem:[#allocation5 + $0x10c] sm:$0xf] }
  0xe5   : > { %v978_v60 = vadd.f32 %v977_v55, %v909_v57  ;;  %947 = vmatmul.bf16.gmra.mxu0 %v1673_v51  ;;  %v1178_v61 = vsel %vm1130_vm2, %v1106_v48, %v1154_v59  ;;  %v1696_v48 = vld [vmem:[#allocation5 + $0x108] sm:$0xf]  ;;  %v1855_v51 = vld [vmem:[#allocation5 + $0x110] sm:$0xf0]  ;;  %v1698_v55 = vld [vmem:[#allocation5 + $0x114] sm:$0xf0] }
  0xe6   : > { %1016 = vmatmul.bf16.gmra.mxu1 %v1677_v52  ;;  %v2446_v63 = vmul.f32 1.4142135, %v1178_v61  ;;  %v1701_v61 = vor.u32 %v1854_v53, %v1698_v55 }
  0xe7   : > { %v1047_v0 = vadd.f32 %v1046_v22, %v978_v60  ;;  %v1697_v60 = vor.u32 %v1855_v51, %v1696_v48 }
  0xe8   : > { %1226 = vst [vmem:[%s2441_s9 + $0x8] sm:$0xff] %v2446_v63  ;;  %v1255_v2 = vpack.c.bf16 %v2446_v63, %v2438_v46 }
  0xe9   : > { %v1107_v5 = vadd.f32 %v2434_v25, %v1047_v0 }
  0xea   : > { %v910_v9 = vpop.f32.mrf.mxu0 }
  0xeb   : > { %v979_v10 = vpop.f32.mrf.mxu1  ;;  %v911_v11 = vadd.f32 %v910_v9, %v467_v1  ;;  %v1053_v12 = vpop.f32.mrf.mxu2  ;;  %vm1131_vm3 = vcmp.ge.f32.partialorder %v1107_v5, 0.0  ;;  %v1155_v13 = vmul.f32 0.2, %v1107_v5 }
  0xed   : > { %v980_v15 = vadd.f32 %v979_v10, %v911_v11  ;;  %v1179_v18 = vsel %vm1131_vm3, %v1107_v5, %v1155_v13 }
  0xee   : > { %v2453_v21 = vmul.f32 1.4142135, %v1179_v18 }
  0xef   : > { %v1049_v22 = vadd.f32 %v1048_v34, %v980_v15 }
  0xf0   : > { %1789 = vmatmul.msk.bf16.gmra.mxu2 %vm857_vm0, %v1705_v14  ;;  %1227 = vst [vmem:[%s2441_s9 + $0x10] sm:$0xff] %v2453_v21 }
  0xf1   : > { %v1108_v24 = vadd.f32 %v2434_v25, %v1049_v22 }
  0xf2   : > { %v913_v28 = vpop.f32.mrf.mxu0 }
  0xf3   : > { %v982_v29 = vpop.f32.mrf.mxu1  ;;  %v914_v30 = vadd.f32 %v913_v28, %v472_v43  ;;  %v1056_v31 = vpop.f32.mrf.mxu2  ;;  %vm1132_vm4 = vcmp.ge.f32.partialorder %v1108_v24, 0.0  ;;  %v1156_v32 = vmul.f32 0.2, %v1108_v24 }
  0xf5   : > { %v983_v33 = vadd.f32 %v982_v29, %v914_v30  ;;  %952 = vmatmul.bf16.gmra.mxu0 %v1685_v26  ;;  %v1180_v37 = vsel %vm1132_vm4, %v1108_v24, %v1156_v32 }
  0xf6   : > { %1021 = vmatmul.bf16.gmra.mxu1 %v1689_v27  ;;  %v2459_v34 = vmul.f32 1.4142135, %v1180_v37 }
  0xf7   : > { %v1052_v38 = vadd.f32 %v1051_v58, %v983_v33 }
  0xf8   : > { %1228 = vst [vmem:[%s2441_s9 + $0x18] sm:$0xff] %v2459_v34  ;;  %v1256_v39 = vpack.c.bf16 %v2459_v34, %v2453_v21 }
  0xf9   : > { %v1109_v40 = vadd.f32 %v2434_v25, %v1052_v38 }
  0xfa   : > { %v915_v41 = vpop.f32.mrf.mxu0 }
  0xfb   : > { %v984_v42 = vpop.f32.mrf.mxu1  ;;  %v916_v43 = vadd.f32 %v915_v41, %v2419_v4  ;;  %v1058_v44 = vpop.f32.mrf.mxu2  ;;  %vm1133_vm5 = vcmp.ge.f32.partialorder %v1109_v40, 0.0  ;;  %v1157_v45 = vmul.f32 0.2, %v1109_v40 }
  0xfd   : > { %v985_v47 = vadd.f32 %v984_v42, %v916_v43  ;;  %v1181_v52 = vsel %vm1133_vm5, %v1109_v40, %v1157_v45 }
  0xfe   : > { %v2467_v57 = vmul.f32 1.4142135, %v1181_v52 }
  0xff   : > { %v1054_v58 = vadd.f32 %v1053_v12, %v985_v47 }
 0x100   : > { %1229 = vst [vmem:[%s2441_s9 + $0x20] sm:$0xff] %v2467_v57 }
 0x101   : > { %v1110_v59 = vadd.f32 %v2434_v25, %v1054_v58 }
 0x102   : > { %v918_v4 = vpop.f32.mrf.mxu0 }
 0x103   : > { %v987_v0 = vpop.f32.mrf.mxu1  ;;  %v919_v1 = vadd.f32 %v918_v4, %v2409_v56  ;;  %v1061_v5 = vpop.f32.mrf.mxu2  ;;  %vm1134_vm6 = vcmp.ge.f32.partialorder %v1110_v59, 0.0  ;;  %v1158_v6 = vmul.f32 0.2, %v1110_v59 }
 0x105   : > { %v988_v8 = vadd.f32 %v987_v0, %v919_v1  ;;  %957 = vmatmul.bf16.gmra.mxu0 %v1697_v60  ;;  %v1182_v9 = vsel %vm1134_vm6, %v1110_v59, %v1158_v6 }
 0x106   : > { %1026 = vmatmul.bf16.gmra.mxu1 %v1701_v61  ;;  %v2473_v10 = vmul.f32 1.4142135, %v1182_v9 }
 0x107   : > { %v1057_v11 = vadd.f32 %v1056_v31, %v988_v8 }
 0x108   : > { %1230 = vst [vmem:[%s2441_s9 + $0x28] sm:$0xff] %v2473_v10  ;;  %v1257_v12 = vpack.c.bf16 %v2473_v10, %v2467_v57  ;;  %v1792_v57 = vld [vmem:[%s2692_s4] sm:$0xf]  ;;  %v1876_v10 = vld [vmem:[%s2692_s4 + $0x4] sm:$0xf0] }
 0x109   : > { %v1111_v13 = vadd.f32 %v2434_v25, %v1057_v11 }
 0x10a   : > { %v920_v14 = vpop.f32.mrf.mxu0 }
 0x10b   : > { %v989_v56 = vpop.f32.mrf.mxu1  ;;  %v921_v15 = vadd.f32 %v920_v14, %v2417_v3  ;;  %v1063_v16 = vpop.f32.mrf.mxu2  ;;  %vm1135_vm7 = vcmp.ge.f32.partialorder %v1111_v13, 0.0  ;;  %v1159_v17 = vmul.f32 0.2, %v1111_v13 }
 0x10d   : > { %v990_v18 = vadd.f32 %v989_v56, %v921_v15  ;;  %v1183_v19 = vsel %vm1135_vm7, %v1111_v13, %v1159_v17 }
 0x10e   : > { %v2481_v20 = vmul.f32 1.4142135, %v1183_v19 }
 0x10f   : > { %v1059_v22 = vadd.f32 %v1058_v44, %v990_v18 }
 0x110   : > { %1231 = vst [vmem:[%s2441_s9 + $0x30] sm:$0xff] %v2481_v20 }
 0x111   : > { %v1112_v24 = vadd.f32 %v2434_v25, %v1059_v22 }
 0x112   : > { %v923_v26 = vpop.f32.mrf.mxu0 }
 0x113   : > { %v992_v27 = vpop.f32.mrf.mxu1  ;;  %v924_v28 = vadd.f32 %v923_v26, %v2404_v54  ;;  %v1066_v29 = vpop.f32.mrf.mxu2  ;;  %vm1136_vm8 = vcmp.ge.f32.partialorder %v1112_v24, 0.0  ;;  %v1160_v3 = vmul.f32 0.2, %v1112_v24 }
 0x115   : > { %v993_v30 = vadd.f32 %v992_v27, %v924_v28  ;;  %v1184_v31 = vsel %vm1136_vm8, %v1112_v24, %v1160_v3 }
 0x116   : > { %v2487_v32 = vmul.f32 1.4142135, %v1184_v31 }
 0x117   : > { %v1062_v33 = vadd.f32 %v1061_v5, %v993_v30 }
 0x118   : > { %1232 = vst [vmem:[%s2441_s9 + $0x38] sm:$0xff] %v2487_v32  ;;  %v1258_v37 = vpack.c.bf16 %v2487_v32, %v2481_v20 }
 0x119   : > { %v1113_v38 = vadd.f32 %v2434_v25, %v1062_v33  ;;  %v2521_v33 = vpop.permute.xlu1 %561 }
 0x11a   : > { %v925_v40 = vpop.f32.mrf.mxu0 }
 0x11b   : > { %v994_v41 = vpop.f32.mrf.mxu1  ;;  %v926_v54 = vadd.f32 %v925_v40, %v2427_v23  ;;  %v1068_v42 = vpop.f32.mrf.mxu2  ;;  %vm1137_vm9 = vcmp.ge.f32.partialorder %v1113_v38, 0.0  ;;  %v1161_v43 = vmul.f32 0.2, %v1113_v38 }
 0x11d   : > { %v995_v44 = vadd.f32 %v994_v41, %v926_v54  ;;  %v1185_v45 = vsel %vm1137_vm9, %v1113_v38, %v1161_v43  ;;  %vm1330_vm9 = vcmask 523264  }
 0x11e   : > { %v2495_v47 = vmul.f32 1.4142135, %v1185_v45 }
 0x11f   : > { %v1064_v48 = vadd.f32 %v1063_v16, %v995_v44 }
 0x120   : > { %1233 = vst [vmem:[%s2441_s9 + $0x40] sm:$0xff] %v2495_v47 }
 0x121   : > { %v1114_v51 = vadd.f32 %v2434_v25, %v1064_v48 }
 0x122   : > { %v928_v52 = vpop.f32.mrf.mxu0 }
 0x123   : > { %v997_v53 = vpop.f32.mrf.mxu1  ;;  %v929_v55 = vadd.f32 %v928_v52, %v2383_v35  ;;  %v1071_v58 = vpop.f32.mrf.mxu2  ;;  %vm1138_vm10 = vcmp.ge.f32.partialorder %v1114_v51, 0.0  ;;  %v1162_v23 = vmul.f32 0.2, %v1114_v51 }
 0x125   : > { %v998_v59 = vadd.f32 %v997_v53, %v929_v55  ;;  %v1186_v60 = vsel %vm1138_vm10, %v1114_v51, %v1162_v23 }
 0x126   : > { %v2501_v61 = vmul.f32 1.4142135, %v1186_v60 }
 0x127   : > { %v1067_v4 = vadd.f32 %v1066_v29, %v998_v59 }
 0x128   : > { %1234 = vst [vmem:[%s2441_s9 + $0x48] sm:$0xff] %v2501_v61  ;;  %v1259_v0 = vpack.c.bf16 %v2501_v61, %v2495_v47 }
 0x129   : > { %v1115_v1 = vadd.f32 %v2434_v25, %v1067_v4 }
 0x12a   : > { %v930_v5 = vpop.f32.mrf.mxu0 }
 0x12b   : > { %v999_v6 = vpop.f32.mrf.mxu1  ;;  %v931_v35 = vadd.f32 %v930_v5, %v2399_v50  ;;  %v1073_v8 = vpop.f32.mrf.mxu2  ;;  %vm1139_vm11 = vcmp.ge.f32.partialorder %v1115_v1, 0.0  ;;  %v1163_v9 = vmul.f32 0.2, %v1115_v1 }
 0x12d   : > { %v1000_v11 = vadd.f32 %v999_v6, %v931_v35  ;;  %v1187_v13 = vsel %vm1139_vm11, %v1115_v1, %v1163_v9 }
 0x12e   : > { %v2509_v14 = vmul.f32 1.4142135, %v1187_v13 }
 0x12f   : > { %v1069_v56 = vadd.f32 %v1068_v42, %v1000_v11 }
 0x130   : > { %1235 = vst [vmem:[%s2441_s9 + $0x50] sm:$0xff] %v2509_v14 }
 0x131   : > { %v1116_v15 = vadd.f32 %v2434_v25, %v1069_v56 }
 0x132   : > { %v933_v16 = vpop.f32.mrf.mxu0 }
 0x133   : > { %v1002_v17 = vpop.f32.mrf.mxu1  ;;  %v934_v18 = vadd.f32 %v933_v16, %v2411_v62  ;;  %v1076_v19 = vpop.f32.mrf.mxu2  ;;  %vm1140_vm12 = vcmp.ge.f32.partialorder %v1116_v15, 0.0  ;;  %v1164_v50 = vmul.f32 0.2, %v1116_v15 }
 0x135   : > { %v1003_v22 = vadd.f32 %v1002_v17, %v934_v18  ;;  %v1188_v24 = vsel %vm1140_vm12, %v1116_v15, %v1164_v50 }
 0x136   : > { %v2515_v26 = vmul.f32 1.4142135, %v1188_v24 }
 0x137   : > { %v1072_v27 = vadd.f32 %v1071_v58, %v1003_v22  ;;  %v2528_v58 = vpop.permute.xlu1 %556 }
 0x138   : > { %1236 = vst [vmem:[%s2441_s9 + $0x58] sm:$0xff] %v2515_v26 }
 0x139   : > { %v1117_v28 = vadd.f32 %v2434_v25, %v1072_v27 }
 0x13a   : > { %v935_v29 = vpop.f32.mrf.mxu0 }
 0x13b   : > { %v1004_v3 = vpop.f32.mrf.mxu1  ;;  %v936_v30 = vadd.f32 %v935_v29, %v2421_v7  ;;  %vm1141_vm13 = vcmp.ge.f32.partialorder %v1117_v28, 0.0  ;;  %v1165_v31 = vmul.f32 0.2, %v1117_v28  ;;  %v1078_v38 = vpop.f32.mrf.mxu2 }
 0x13c   : > { %v2526_v7 = vpop.permute.xlu2 %566 }
 0x13d   : > { %v1005_v62 = vadd.f32 %v1004_v3, %v936_v30  ;;  %v1189_v40 = vsel %vm1141_vm13, %v1117_v28, %v1165_v31 }
 0x13e   : > { %v1213_v41 = vmul.f32 1.4142135, %v1189_v40 }
 0x13f   : > { %v1074_v54 = vadd.f32 %v1073_v8, %v1005_v62  ;;  %v532_v13 = vpop.permute.xlu1 %531 }
 0x140   : > { %1237 = vst [vmem:[%s2441_s9 + $0x60] sm:$0xff] %v1213_v41 }
 0x141   : > { %v1118_v42 = vadd.f32 %v2434_v25, %v1074_v54 }
 0x142   : > { %v938_v43 = vpop.f32.mrf.mxu0 }
 0x143   : > { %v1007_v44 = vpop.f32.mrf.mxu1  ;;  %v939_v45 = vadd.f32 %v938_v43, %v2385_v36  ;;  %vm1142_vm14 = vcmp.ge.f32.partialorder %v1118_v42, 0.0  ;;  %v1166_v48 = vmul.f32 0.2, %v1118_v42  ;;  %v1081_v23 = vpop.f32.mrf.mxu2 }
 0x144   : > { %v542_v8 = vpop.permute.xlu2 %541  ;;  %v552_v43 = vpop.permute.xlu0 %551 }
 0x145   : > { %v1008_v51 = vadd.f32 %v1007_v44, %v939_v45  ;;  %v1190_v52 = vsel %vm1142_vm14, %v1118_v42, %v1166_v48  ;;  %v1260_v45 = vpack.c.bf16 %v2515_v26, %v2509_v14 }
 0x146   : > { %v1214_v53 = vmul.f32 1.4142135, %v1190_v52 }
 0x147   : > { %v1077_v55 = vadd.f32 %v1076_v19, %v1008_v51 }
 0x148   : > { %1238 = vst [vmem:[%s2441_s9 + $0x68] sm:$0xff] %v1214_v53 }
 0x149   : > { %v1119_v59 = vadd.f32 %v2434_v25, %v1077_v55 }
 0x14a   : > { %v940_v60 = vpop.f32.mrf.mxu0 }
 0x14b   : > { %v1009_v4 = vpop.f32.mrf.mxu1  ;;  %v941_v1 = vadd.f32 %v940_v60, %v2397_v49  ;;  %vm1143_vm15 = vcmp.ge.f32.partialorder %v1119_v59, 0.0  ;;  %v1167_v36 = vmul.f32 0.2, %v1119_v59  ;;  %v1083_v56 = vpop.f32.mrf.mxu2 }
 0x14c   : > { %v537_v27 = vpop.permute.xlu2 %536  ;;  %v547_v26 = vpop.permute.xlu0 %546 }
 0x14d   : > { %v1010_v5 = vadd.f32 %v1009_v4, %v941_v1  ;;  %v1191_v6 = vsel %vm1143_vm15, %v1119_v59, %v1167_v36 }
 0x14e   : > { %v1215_v35 = vmul.f32 1.4142135, %v1191_v6 }
 0x14f   : > { %v1079_v9 = vadd.f32 %v1078_v38, %v1010_v5  ;;  %v1261_v38 = vpack.c.bf16 %v1214_v53, %v1213_v41 }
 0x150   : > { %1239 = vst [vmem:[%s2441_s9 + $0x70] sm:$0xff] %v1215_v35 }
 0x151   : > { %v1120_v11 = vadd.f32 %v2434_v25, %v1079_v9 }
 0x152   : > { %v943_v15 = vpop.f32.mrf.mxu0 }
 0x153   : > { %v1012_v16 = vpop.f32.mrf.mxu1  ;;  %v944_v17 = vadd.f32 %v943_v15, %v532_v13  ;;  %vm1144_vm0 = vcmp.ge.f32.partialorder %v1120_v11, 0.0  ;;  %v1168_v18 = vmul.f32 0.2, %v1120_v11  ;;  %v1086_v31 = vpop.f32.mrf.mxu2  ;;  %v1793_v13 = vor.u32 %v1876_v10, %v1792_v57 }
 0x155   : > { %v1013_v19 = vadd.f32 %v1012_v16, %v944_v17  ;;  %v1192_v49 = vsel %vm1144_vm0, %v1120_v11, %v1168_v18 }
 0x156   : > { %v1216_v50 = vmul.f32 1.4142135, %v1192_v49 }
 0x157   : > { %v1082_v22 = vadd.f32 %v1081_v23, %v1013_v19 }
 0x158   : > { %1240 = vst [vmem:[%s2441_s9 + $0x78] sm:$0xff] %v1216_v50  ;;  %v1262_v24 = vpack.c.bf16 %v1216_v50, %v1215_v35 }
 0x159   : > { %v1121_v28 = vadd.f32 %v2434_v25, %v1082_v22 }
 0x15a   : > { %v945_v29 = vpop.f32.mrf.mxu0  ;;  %1340 = vmatpush.bf16.msra.mxu3 %v1262_v24 }
 0x15b   : > { %v1014_v3 = vpop.f32.mrf.mxu1  ;;  %v946_v30 = vadd.f32 %v945_v29, %v537_v27  ;;  %vm1145_vm1 = vcmp.ge.f32.partialorder %v1121_v28, 0.0  ;;  %v1169_v62 = vmul.f32 0.2, %v1121_v28  ;;  %v1088_v23 = vpop.f32.mrf.mxu2  ;;  %v1800_v27 = vld [vmem:[%s2692_s4 + $0x10] sm:$0xf] }
 0x15d   : > { %v1015_v40 = vadd.f32 %v1014_v3, %v946_v30  ;;  %v1193_v54 = vsel %vm1145_vm1, %v1121_v28, %v1169_v62 }
 0x15e   : > { %1341 = vmatpush.bf16.msra.mxu3 %v1261_v38  ;;  %v2537_v42 = vmul.f32 1.4142135, %v1193_v54 }
 0x15f   : > { %v1084_v44 = vadd.f32 %v1083_v56, %v1015_v40 }
 0x160   : > { %1241 = vst [vmem:[%s2441_s9 + $0x80] sm:$0xff] %v2537_v42 }
 0x161   : > { %v1122_v48 = vadd.f32 %v2434_v25, %v1084_v44 }
 0x162   : > { %v948_v51 = vpop.f32.mrf.mxu0  ;;  %1342 = vmatpush.bf16.msra.mxu3 %v1260_v45 }
 0x163   : > { %v1017_v52 = vpop.f32.mrf.mxu1  ;;  %v949_v55 = vadd.f32 %v948_v51, %v542_v8  ;;  %vm1146_vm2 = vcmp.ge.f32.partialorder %v1122_v48, 0.0  ;;  %v1170_v41 = vmul.f32 0.2, %v1122_v48  ;;  %v1091_v8 = vpop.f32.mrf.mxu2 }
 0x165   : > { %v1018_v53 = vadd.f32 %v1017_v52, %v949_v55  ;;  %v1194_v59 = vsel %vm1146_vm2, %v1122_v48, %v1170_v41 }
 0x166   : > { %1343 = vmatpush.bf16.msra.mxu3 %v1259_v0  ;;  %v2547_v60 = vmul.f32 1.4142135, %v1194_v59 }
 0x167   : > { %v1087_v14 = vadd.f32 %v1086_v31, %v1018_v53 }
 0x168   : > { %1242 = vst [vmem:[%s2441_s9 + $0x88] sm:$0xff] %v2547_v60 }
 0x169   : > { %v1123_v4 = vadd.f32 %v2434_v25, %v1087_v14 }
 0x16a   : > { %v950_v1 = vpop.f32.mrf.mxu0  ;;  %1344 = vmatpush.bf16.msra.mxu3 %v1258_v37 }
 0x16b   : > { %v1019_v36 = vpop.f32.mrf.mxu1  ;;  %v951_v5 = vadd.f32 %v950_v1, %v547_v26  ;;  %vm1147_vm3 = vcmp.ge.f32.partialorder %v1123_v4, 0.0  ;;  %v1171_v6 = vmul.f32 0.2, %v1123_v4  ;;  %v1093_v15 = vpop.f32.mrf.mxu2 }
 0x16d   : > { %v1020_v47 = vadd.f32 %v1019_v36, %v951_v5  ;;  %v1195_v61 = vsel %vm1147_vm3, %v1123_v4, %v1171_v6  ;;  %v1875_v5 = vld [vmem:[%s2692_s4 + $0x4] sm:$0xf]  ;;  %v1794_v6 = vld [vmem:[%s2692_s4 + $0x8] sm:$0xf0] }
 0x16e   : > { %1345 = vmatpush.bf16.msra.mxu3 %v1257_v12  ;;  %v2558_v0 = vmul.f32 1.4142135, %v1195_v61  ;;  %v1797_v61 = vor.u32 %v1875_v5, %v1794_v6 }
 0x16f   : > { %v1089_v35 = vadd.f32 %v1088_v23, %v1020_v47  ;;  %v1808_v23 = vld [vmem:[%s2692_s4 + $0x20] sm:$0xf]  ;;  %v1263_v47 = vpack.c.bf16 %v2547_v60, %v2537_v42  ;;  %v1879_v42 = vld [vmem:[%s2692_s4 + $0x24] sm:$0xf]  ;;  %v1810_v60 = vld [vmem:[%s2692_s4 + $0x28] sm:$0xf0] }
 0x170   : > { %1243 = vst [vmem:[%s2441_s9 + $0x90] sm:$0xff] %v2558_v0 }
 0x171   : > { %v1124_v9 = vadd.f32 %v2434_v25, %v1089_v35  ;;  %v1802_v35 = vld [vmem:[%s2692_s4 + $0x18] sm:$0xf0] }
 0x172   : > { %v953_v20 = vpop.f32.mrf.mxu0  ;;  %1346 = vmatpush.bf16.msra.mxu3 %v1256_v39 }
 0x173   : > { %v1022_v32 = vpop.f32.mrf.mxu1  ;;  %v954_v12 = vadd.f32 %v953_v20, %v552_v43  ;;  %vm1148_vm4 = vcmp.ge.f32.partialorder %v1124_v9, 0.0  ;;  %v1172_v37 = vmul.f32 0.2, %v1124_v9  ;;  %v1096_v3 = vpop.f32.mrf.mxu2 }
 0x175   : > { %v1023_v11 = vadd.f32 %v1022_v32, %v954_v12  ;;  %v1196_v56 = vsel %vm1148_vm4, %v1124_v9, %v1172_v37  ;;  %v1813_v9 = vor.u32 %v1879_v42, %v1810_v60 }
 0x176   : > { %1347 = vmatpush.bf16.msra.mxu3 %v1255_v2  ;;  %v1220_v21 = vmul.f32 1.4142135, %v1196_v56 }
 0x177   : > { %v1092_v34 = vadd.f32 %v1091_v8, %v1023_v11 }
 0x178   : > { %1244 = vst [vmem:[%s2441_s9 + $0x98] sm:$0xff] %v1220_v21 }
 0x179   : > { %v1125_v39 = vadd.f32 %v2434_v25, %v1092_v34  ;;  %1348 = vmatmul.bf16.vlgmr.msra.gmra.mxu3 %v1793_v13 }
 0x17a   : > { %v955_v16 = vpop.f32.mrf.mxu0 }
 0x17b   : > { %v1024_v17 = vpop.f32.mrf.mxu1  ;;  %v956_v18 = vadd.f32 %v955_v16, %v2528_v58  ;;  %vm1149_vm5 = vcmp.ge.f32.partialorder %v1125_v39, 0.0  ;;  %v1173_v19 = vmul.f32 0.2, %v1125_v39  ;;  %v1878_v58 = vld [vmem:[%s2692_s4 + $0x14] sm:$0xf0]  ;;  %v1098_v52 = vpop.f32.mrf.mxu2 }
 0x17c   : > { %v1801_v31 = vor.u32 %v1878_v58, %v1800_v27 }
 0x17d   : > { %v1025_v49 = vadd.f32 %v1024_v17, %v956_v18  ;;  %v1197_v50 = vsel %vm1149_vm5, %v1125_v39, %v1173_v19 }
 0x17e   : > { %v1221_v22 = vmul.f32 1.4142135, %v1197_v50 }
 0x17f   : > { %v1094_v24 = vadd.f32 %v1093_v15, %v1025_v49 }
 0x180   : > { %1245 = vst [vmem:[%s2441_s9 + $0xa0] sm:$0xff] %v1221_v22 }
 0x181   : > { %v1126_v46 = vadd.f32 %v2434_v25, %v1094_v24 }
 0x182   : > { %v958_v63 = vpop.f32.mrf.mxu0 }
 0x183   : > { %v1027_v2 = vpop.f32.mrf.mxu1  ;;  %v959_v28 = vadd.f32 %v958_v63, %v2521_v33  ;;  %vm1150_vm6 = vcmp.ge.f32.partialorder %v1126_v46, 0.0  ;;  %v1174_v29 = vmul.f32 0.2, %v1126_v46 }
 0x185   : > { %v1028_v30 = vadd.f32 %v1027_v2, %v959_v28  ;;  %v1198_v62 = vsel %vm1150_vm6, %v1126_v46, %v1174_v29 }
 0x186   : > { %v1222_v38 = vmul.f32 1.4142135, %v1198_v62 }
 0x187   : > { %v1097_v40 = vadd.f32 %v1096_v3, %v1028_v30 }
 0x188   : > { %1246 = vst [vmem:[%s2441_s9 + $0xa8] sm:$0xff] %v1222_v38  ;;  %v1265_v36 = vpack.c.bf16 %v1222_v38, %v1221_v22 }
 0x189   : > { %v1127_v54 = vadd.f32 %v2434_v25, %v1097_v40  ;;  %1353 = vmatmul.bf16.gmra.mxu3 %v1801_v31 }
 0x18a   : > { %v960_v43 = vpop.f32.mrf.mxu0 }
 0x18b   : > { %v961_v44 = vadd.f32 %v960_v43, %v2526_v7  ;;  %vm1151_vm7 = vcmp.ge.f32.partialorder %v1127_v54, 0.0  ;;  %v1175_v45 = vmul.f32 0.2, %v1127_v54  ;;  %v1029_v33 = vpop.f32.mrf.mxu1  ;;  %v1880_v7 = vld [vmem:[%s2692_s4 + $0x24] sm:$0xf0] }
 0x18c   : > { %v1809_v14 = vor.u32 %v1880_v7, %v1808_v23 }
 0x18d   : > { %v1030_v48 = vadd.f32 %v1029_v33, %v961_v44  ;;  %v1199_v51 = vsel %vm1151_vm7, %v1127_v54, %v1175_v45 }
 0x18e   : > { %v1223_v55 = vmul.f32 1.4142135, %v1199_v51 }
 0x18f   : > { %v1099_v41 = vadd.f32 %v1098_v52, %v1030_v48 }
 0x190   : > { %1247 = vst [vmem:[%s2441_s9 + $0xb0] sm:$0xff] %v1223_v55 }
 0x191   : > { %v1128_v53 = vadd.f32 %v2434_v25, %v1099_v41  ;;  %v1264_v25 = vpack.c.bf16 %v1220_v21, %v2558_v0  ;;  %v1877_v0 = vld [vmem:[%s2692_s4 + $0x14] sm:$0xf] }
 0x192   : > { %v1805_v8 = vor.u32 %v1877_v0, %v1802_v35 }
 0x193   : > { %vm1152_vm8 = vcmp.ge.f32.partialorder %v1128_v53, 0.0  ;;  %v1176_v59 = vmul.f32 0.2, %v1128_v53 }
 0x195   : > { %v1200_v26 = vsel %vm1152_vm8, %v1128_v53, %v1176_v59 }
 0x196   : > { %v1224_v4 = vmul.f32 1.4142135, %v1200_v26 }
 0x198   : > { %1248 = vst [vmem:[%s2441_s9 + $0xb8] sm:$0xff] %v1224_v4  ;;  %v1266_v1 = vpack.c.bf16 %v1224_v4, %v1223_v55 }
 0x199   : > { %1358 = vmatmul.bf16.gmra.mxu3 %v1809_v14 }
 0x19a   : > { %1368 = vmatpush.bf16.msrb.mxu3 %v1266_v1 }
 0x19e   : > { %1369 = vmatpush.bf16.msrb.mxu3 %v1265_v36 }
 0x1a2   : > { %1370 = vmatpush.bf16.msrb.mxu3 %v1264_v25 }
 0x1a6   : > { %1371 = vmatpush.bf16.msrb.mxu3 %v1263_v47 }
 0x1a9   : > { %1814 = vmatmul.msk.bf16.vlgmr.msrb.gmra.mxu3 %vm1330_vm9, %v1797_v61 }
 0x1b9   : > { %1815 = vmatmul.msk.bf16.gmra.mxu3 %vm1330_vm9, %v1805_v8 }
 0x1c9   : > { %1816 = vmatmul.msk.bf16.gmra.mxu3 %vm1330_vm9, %v1813_v9 }
 0x1ca   : > { %2047 = shalt.err (!%p2044_p12)
}
 0x1cb   : > { %s2131_s9 = smov 128   ;;  %s2132_s12 = smov 256   ;;  %v1276_v11 = vpop.permute.xlu0 %1275  ;;  %v1281_v34 = vpop.permute.xlu1 %1280 }
 0x1cc   : > { %s2133_s14 = smov 8   ;;  %s1884_s17 = smul.u32 48, %s2267_s16  ;;  %v1286_v17 = vpop.permute.xlu2 %1285 }
 0x1cd   : > { %1891 = dma.vmem_to_hbm [thread:$0]  (%p2241_p7), %s1412_s18, 3072, %s1414_s19, %s1395_s26, %s2131_s9, %s2132_s12, %s2133_s14  }
 0x1ce   : > { %s2642_s20 = scalar_lea.vmem [#allocation8], %s1884_s17  ;;  %s1426_s26 = scalar_lea.hbm %s2695_s7, %s1817_s13 }
 0x1cf   : > { %s1427_s23 = sshll.u32 %s2642_s20, 4  ;;  %s1429_s10 = sshll.u32 %s1426_s26, 4  ;;  %s1428_s23 = int_to_ptr.vmem [resolvable:$true] %s1427_s23  ;;  %s1430_s10 = int_to_ptr.hbm [resolvable:$true] %s1429_s10 }
 0x1d0   : > { %s1400_s22 = scalar_lea.sflag [#allocation9], %s2267_s16  ;;  %s2062_s29 = sshra.s32 %s1430_s10, 4  ;;  %s2063_s29 = int_to_ptr.hbm [resolvable:$true] %s2062_s29 }
 0x1d1   : > { %s2064_s11 = scalar_lea.hbm %s2063_s29, 48  ;;  %s2068_s13 = scalar_lea.hbm %s2695_s7, 96 }
 0x1d2   : > { %p2065_p13 = scmp.ne.s32.totalorder %s2063_s29, %s2064_s11  ;;  %p2069_p5 = scmp.lt.s32.totalorder %s2063_s29, %s2695_s7 }
 0x1d3   : > { %v1291_v50 = vpop.permute.xlu0 %1290  ;;  %v1296_v63 = vpop.permute.xlu1 %1295  ;;  %p2070_p1 = scmp.lt.s32.totalorder %s2068_s13, %s2064_s11 }
 0x1d4   : > { %v1301_v28 = vpop.permute.xlu2 %1300  ;;  %p2066_p0 = pnand %p2065_p13, %p2241_p7 }
 0x1d5   : > { %p2071_p4 = por %p2070_p1, %p2069_p5 }
 0x1d6   : > { %p2067_p3 = pneg %p2066_p0 }
 0x1d8   : > { %p2072_p8 = pnand %p2071_p4, %p2067_p3 }
 0x1fc   : > { %v1349_v20 = vpop.f32.mrf.mxu3 }
 0x1fd   : > { %v1350_v13 = vadd.f32 %v1349_v20, %v1276_v11 }
 0x204   : > { %v1351_v32 = vpop.f32.mrf.mxu3 }
 0x205   : > { %v1352_v39 = vadd.f32 %v1351_v32, %v1281_v34 }
 0x20c   : > { %v1354_v57 = vpop.f32.mrf.mxu3 }
 0x20d   : > { %v1355_v18 = vadd.f32 %v1354_v57, %v1286_v17 }
 0x214   : > { %v1356_v10 = vpop.f32.mrf.mxu3 }
 0x215   : > { %v1357_v22 = vadd.f32 %v1356_v10, %v1291_v50 }
 0x21c   : > { %v1359_v12 = vpop.f32.mrf.mxu3 }
 0x21d   : > { %v1360_v2 = vadd.f32 %v1359_v12, %v1296_v63 }
 0x224   : > { %v1361_v37 = vpop.f32.mrf.mxu3 }
 0x225   : > { %v1362_v29 = vadd.f32 %v1361_v37, %v1301_v28 }
 0x22c   : > { %v1373_v56 = vpop.f32.mrf.mxu3 }
 0x22d   : > { %v1374_v21 = vadd.f32 %v1373_v56, %v1350_v13 }
 0x22f   : > { %1388 = vst [vmem:[%s2642_s20] sm:$0xff] %v1374_v21 }
 0x234   : > { %v1375_v15 = vpop.f32.mrf.mxu3 }
 0x235   : > { %v1376_v16 = vadd.f32 %v1375_v15, %v1352_v39 }
 0x237   : > { %1389 = vst [vmem:[%s2642_s20 + $0x8] sm:$0xff] %v1376_v16 }
 0x23c   : > { %v1378_v19 = vpop.f32.mrf.mxu3 }
 0x23d   : > { %v1379_v49 = vadd.f32 %v1378_v19, %v1355_v18 }
 0x23f   : > { %1390 = vst [vmem:[%s2642_s20 + $0x10] sm:$0xff] %v1379_v49 }
 0x244   : > { %v1380_v24 = vpop.f32.mrf.mxu3 }
 0x245   : > { %v1381_v46 = vadd.f32 %v1380_v24, %v1357_v22 }
 0x247   : > { %1391 = vst [vmem:[%s2642_s20 + $0x18] sm:$0xff] %v1381_v46 }
 0x24c   : > { %v1383_v27 = vpop.f32.mrf.mxu3 }
 0x24d   : > { %v1384_v58 = vadd.f32 %v1383_v27, %v1360_v2 }
 0x24f   : > { %1392 = vst [vmem:[%s2642_s20 + $0x20] sm:$0xff] %v1384_v58 }
 0x254   : > { %v1385_v3 = vpop.f32.mrf.mxu3 }
 0x255   : > { %v1386_v30 = vadd.f32 %v1385_v3, %v1362_v29 }
 0x257   : > { %1393 = vst [vmem:[%s2642_s20 + $0x28] sm:$0xff] %v1386_v30 }
 0x258   : > { %2075 = shalt.err (!%p2072_p8)
}
 0x259   : > { %1892 = dma.vmem_to_hbm [thread:$0]  (%p2241_p7), %s1428_s23, 768, %s1430_s10, %s1400_s22, %s2131_s9, %s2132_s12, %s2133_s14  }
 0x25a PF: > { %s1444_s16 = sand.u32 1, %s2110_s24   ;;  %p2706_p11 = scmp.ge.s32.totalorder %s2122_s27, 2 }
 0x25b   : > { %s1445_s20 = scalar_lea.sflag [#allocation4], %s1444_s16 }
 0x25c   : > { %p1904_p9 = pnand %p2706_p11, %p2209_p6 }
 0x25e   : > { %p1905_p2 = pneg %p1904_p9 }
 0x260   : > { %2101 = dma.done.wait (%p1905_p2), %s1445_s20, 3072  }
 0x261   : > { %2103 = vsyncadd (%p1905_p2), %s1445_s20, 4294964224  ;;  %s1455_s18 = scalar_lea.sflag [#allocation9], %s1444_s16 }
 0x262   : > { %2105 = dma.done.wait (%p1905_p2), %s1455_s18, 768  }
 0x263   : > { %2107 = vsyncadd (%p1905_p2), %s1455_s18, 4294966528  ;;  %s2707_s21 = sld [smem:[#allocation14_spill]]  ;;  %p25_p7 = scmp.ge.s32.totalorder %s2227_s15, 4  }
 0x264   : > { %s2708_s26 = sld [smem:[#allocation15_spill]]  ;;  %s2709_s24 = smov %s2114_s25 }
 0x265   : > { %s2711_s27 = smov %s2227_s15  ;;  %27 = sbr.rel (!%p25_p7) target bundleno = 10 (0xa), region = 113 }
 0x269   : > { %s2710_s25 = smov %s2707_s21 }
 0x26a   :  { %1461 = vsyncpa [#allocation3], 1 }
 0x26b   :  { %1463 = vsyncpa [#allocation3 + $0x1], 1 }
 0x26c   :  { %1464 = vsyncpa [#allocation6], 1 }
 0x26d   :  { %1465 = vsyncpa [#allocation4], 1 }
 0x26e   :  { %1467 = vsyncpa [#allocation4 + $0x1], 1 }
 0x26f   :  { %1468 = vsyncpa [#allocation9], 1 }
 0x270   :  { %1470 = vsyncpa [#allocation9 + $0x1], 1 }

</bundles_post_ra>
